<compile_context>
chip_gen: v7x
topology: tpu7x:2x2x1
jax: 0.10.0
libtpu: 0.0.40
codegen_flags: <defaults>
</compile_context>

<pallas_src>
import functools

import jax
import jax.numpy as jnp
from jax.experimental import pallas as pl
from jax.experimental.pallas import tpu as pltpu


def lstm_kernel(x_ref, h0_ref, c0_ref, wih_ref, whh_ref, b_ref, wfc_ref, bfc_ref,
                y_ref, hout_ref, cout_ref, xw_s, h_all_s, *, seq_len, batch, hidden):
    T, Bp, H = seq_len, batch, hidden
    mm_dtype = wfc_ref.dtype  # matmul operand dtype (bf16 fast path / f32 precise path)

    # (1) Input projection hoisted out of the recurrence: one (T*Bp, D) @ (D, 4H) MXU matmul
    #     with the fused bias (b_ih + b_hh). Gate columns are pre-ordered i|f|o|g.
    xw_s[...] = (jnp.dot(x_ref[...], wih_ref[...], preferred_element_type=jnp.float32)
                 + b_ref[...])

    whh = whh_ref[...]  # keep the recurrent weight resident as a value for the whole loop

    def step(t, carry):
        h, c = carry                                  # f32 state
        row = pl.multiple_of(t * Bp, 8)               # Bp is a multiple of 8
        gates = (xw_s[pl.ds(row, Bp), :]
                 + jnp.dot(h.astype(mm_dtype), whh,
                           preferred_element_type=jnp.float32))        # (Bp, 4H) f32

        # Gate order i|f|o|g: sigmoid only over the first 3H lanes, tanh only over the g band.
        sg = jax.nn.sigmoid(gates[:, :3 * H])
        i = sg[:, 0:H]
        f = sg[:, H:2 * H]
        o = sg[:, 2 * H:3 * H]
        g = jnp.tanh(gates[:, 3 * H:4 * H])

        c_new = f * c + i * g
        h_new = o * jnp.tanh(c_new)
        h_all_s[pl.ds(row, Bp), :] = h_new            # stash h_t (f32) for the fused fc later
        return h_new, c_new

    h_T, c_T = jax.lax.fori_loop(0, T, step, (h0_ref[...], c0_ref[...]),
                                 unroll=min(T, 8))    # full unroll for short T, capped if T grows
    hout_ref[...] = h_T
    cout_ref[...] = c_T

    # (2) fc Linear hoisted out of the recurrence: one (T*Bp, H) @ (H, Op) matmul,
    #     lane-dense (Op is a multiple of 128) slab store.
    y_ref[...] = (jnp.dot(h_all_s[...].astype(mm_dtype), wfc_ref[...],
                          preferred_element_type=jnp.float32)
                  + bfc_ref[...])


def prepare_params(w_ih, w_hh, b_ih, b_hh, w_fc, b_fc, matmul_dtype=jnp.bfloat16):
    """One-time static parameter prep (transpose / gate-reorder / fuse / pad / cast).

    PyTorch layout in:  w_ih (4H, D), w_hh (4H, H) with gate rows i|f|g|o; w_fc (O, H).
    Kernel layout out:  wih_t (D, 4H), whh_t (H, 4H) with gate cols i|f|o|g; b (1, 4H) f32;
                        wfc_t (H, Op), bfc (1, Op) with Op = ceil(O/128)*128 zero-padded.
    """
    H = w_hh.shape[1]
    O = w_fc.shape[0]
    Op = max(128, ((O + 127) // 128) * 128)

    def reorder(w):  # rows i|f|g|o -> i|f|o|g along axis 0
        i, f, g, o = jnp.split(w, 4, axis=0)
        return jnp.concatenate([i, f, o, g], axis=0)

    wih_t = jnp.transpose(reorder(w_ih)).astype(matmul_dtype)                  # (D, 4H)
    whh_t = jnp.transpose(reorder(w_hh)).astype(matmul_dtype)                  # (H, 4H)
    b = reorder(b_ih + b_hh).reshape(1, 4 * H).astype(jnp.float32)             # (1, 4H)
    wfc_t = jnp.pad(jnp.transpose(w_fc).astype(matmul_dtype),
                    ((0, 0), (0, Op - O)))                                     # (H, Op)
    bfc = jnp.pad(b_fc.reshape(1, O).astype(jnp.float32), ((0, 0), (0, Op - O)))  # (1, Op)
    return wih_t, whh_t, b, wfc_t, bfc


@functools.partial(jax.jit, static_argnames=("out_size",))
def lstm_forward(x_btd, h0, c0, wih_t, whh_t, b, wfc_t, bfc, *, out_size):
    """x_btd: (B, T, D) batch_first; h0/c0: (1, B, H). Returns (y (B,T,O), (h_T, c_T))."""
    B, T, D = x_btd.shape
    H = h0.shape[-1]
    Op = wfc_t.shape[1]
    Bp = max(8, ((B + 7) // 8) * 8)          # sublane-aligned batch
    f32 = jnp.float32
    mm_dtype = wfc_t.dtype

    # Per-call layout prep on tiny tensors (fused by XLA under this jit).
    x_tbd = jnp.transpose(x_btd, (1, 0, 2)).astype(mm_dtype)      # (T, B, D) time-major
    h0p = h0[0].astype(f32)
    c0p = c0[0].astype(f32)
    if Bp != B:
        pad = Bp - B
        x_tbd = jnp.pad(x_tbd, ((0, 0), (0, pad), (0, 0)))
        h0p = jnp.pad(h0p, ((0, pad), (0, 0)))
        c0p = jnp.pad(c0p, ((0, pad), (0, 0)))
    x2d = x_tbd.reshape(T * Bp, D)

    kernel = functools.partial(lstm_kernel, seq_len=T, batch=Bp, hidden=H)
    vmem = pltpu.MemorySpace.VMEM

    y2d, h_out, c_out = pl.pallas_call(
        kernel,
        out_shape=(
            jax.ShapeDtypeStruct((T * Bp, Op), f32),   # all timestep outputs (time-major, lane-dense)
            jax.ShapeDtypeStruct((Bp, H), f32),        # final h
            jax.ShapeDtypeStruct((Bp, H), f32),        # final c
        ),
        in_specs=[pl.BlockSpec(memory_space=vmem)] * 8,
        out_specs=(pl.BlockSpec(memory_space=vmem),) * 3,
        scratch_shapes=[
            pltpu.VMEM((T * Bp, 4 * H), f32),          # hoisted input projection x@W_ih + b
            pltpu.VMEM((T * Bp, H), f32),              # all hidden states for the fused fc
        ],
        compiler_params=pltpu.CompilerParams(vmem_limit_bytes=32 * 1024 * 1024),
    )(x2d, h0p, c0p, wih_t, whh_t, b, wfc_t, bfc)

    y = jnp.transpose(y2d.reshape(T, Bp, Op), (1, 0, 2))[:B, :, :out_size]  # (B, T, O)
    h_T = h_out[None, :B]                                                   # (1, B, H)
    c_T = c_out[None, :B]
    return y, (h_T, c_T)


def lstm_forward_ref(x_btd, h0, c0, w_ih, w_hh, b_ih, b_hh, w_fc, b_fc,
                     matmul_dtype=jnp.float32):
    """Pure-JAX reference mirroring PyTorch nn.LSTM (batch_first) + Linear (eval mode).
    matmul_dtype lets the reference mimic the kernel's bf16-operand / f32-accumulate matmuls."""
    H = h0.shape[-1]
    md = matmul_dtype
    wih = w_ih.T.astype(md)
    whh = w_hh.T.astype(md)
    wfc = w_fc.T.astype(md)
    bias = (b_ih + b_hh).astype(jnp.float32)

    def step(carry, x_t):
        h, c = carry
        gates = (jnp.dot(x_t.astype(md), wih, preferred_element_type=jnp.float32)
                 + jnp.dot(h.astype(md), whh, preferred_element_type=jnp.float32)
                 + bias)
        i = jax.nn.sigmoid(gates[:, 0:H])
        f = jax.nn.sigmoid(gates[:, H:2 * H])
        g = jnp.tanh(gates[:, 2 * H:3 * H])
        o = jax.nn.sigmoid(gates[:, 3 * H:4 * H])
        c_new = f * c + i * g
        h_new = o * jnp.tanh(c_new)
        return (h_new, c_new), h_new

    x_tbd = jnp.transpose(x_btd, (1, 0, 2))
    (h_T, c_T), hs = jax.lax.scan(step, (h0[0], c0[0]), x_tbd)
    y = jnp.dot(hs.astype(md), wfc, preferred_element_type=jnp.float32) + b_fc
    return jnp.transpose(y, (1, 0, 2)), (h_T[None], c_T[None])


if __name__ == "__main__":
    input_size = 16
    hidden_size = 32
    output_size = 16
    model_length = 8     # T
    batch_size = 4       # B

    key = jax.random.PRNGKey(0)
    ks = jax.random.split(key, 8)
    bound = 1.0 / jnp.sqrt(hidden_size)

    # Deterministic parameter init (matching PyTorch nn.LSTM / nn.Linear shapes).
    w_ih = jax.random.uniform(ks[0], (4 * hidden_size, input_size), jnp.float32, -bound, bound)
    w_hh = jax.random.uniform(ks[1], (4 * hidden_size, hidden_size), jnp.float32, -bound, bound)
    b_ih = jax.random.uniform(ks[2], (4 * hidden_size,), jnp.float32, -bound, bound)
    b_hh = jax.random.uniform(ks[3], (4 * hidden_size,), jnp.float32, -bound, bound)
    w_fc = jax.random.uniform(ks[4], (output_size, hidden_size), jnp.float32, -bound, bound)
    b_fc = jax.random.uniform(ks[5], (output_size,), jnp.float32, -bound, bound)

    x = jax.random.normal(ks[6], (batch_size, model_length, input_size), jnp.float32)
    # init_state(): zeros of shape (1, B, H)
    h0 = jnp.zeros((1, batch_size, hidden_size), jnp.float32)
    c0 = jnp.zeros((1, batch_size, hidden_size), jnp.float32)

    # --- precise path (f32 matmul operands): exact nn.LSTM semantics at 1e-5 ---
    params_f32 = prepare_params(w_ih, w_hh, b_ih, b_hh, w_fc, b_fc, matmul_dtype=jnp.float32)
    y32, (h32, c32) = lstm_forward(x, h0, c0, *params_f32, out_size=output_size)
    jax.block_until_ready((y32, h32, c32))

    y_ref, (h_ref, c_ref) = lstm_forward_ref(x, h0, c0, w_ih, w_hh, b_ih, b_hh, w_fc, b_fc)
    assert y32.shape == (batch_size, model_length, output_size)
    assert h32.shape == (1, batch_size, hidden_size)
    assert c32.shape == (1, batch_size, hidden_size)
    assert jnp.allclose(y32, y_ref, atol=1e-5), "output mismatch (f32 path)"
    assert jnp.allclose(h32, h_ref, atol=1e-5), "hidden state mismatch (f32 path)"
    assert jnp.allclose(c32, c_ref, atol=1e-5), "cell state mismatch (f32 path)"

    # --- fast path (bf16 matmul operands, f32 accumulate & f32 state) ---
    params_bf16 = prepare_params(w_ih, w_hh, b_ih, b_hh, w_fc, b_fc, matmul_dtype=jnp.bfloat16)
    ybf, (hbf, cbf) = lstm_forward(x, h0, c0, *params_bf16, out_size=output_size)
    jax.block_until_ready((ybf, hbf, cbf))

    ybf_ref, (hbf_ref, cbf_ref) = lstm_forward_ref(
        x, h0, c0, w_ih, w_hh, b_ih, b_hh, w_fc, b_fc, matmul_dtype=jnp.bfloat16)
    assert jnp.allclose(ybf, ybf_ref, atol=2e-3), "output mismatch (bf16 path vs bf16 ref)"
    assert jnp.allclose(hbf, hbf_ref, atol=2e-3), "hidden state mismatch (bf16 path vs bf16 ref)"
    assert jnp.allclose(cbf, cbf_ref, atol=2e-3), "cell state mismatch (bf16 path vs bf16 ref)"
    assert jnp.allclose(ybf, y_ref, atol=5e-2), "bf16 path drifted too far from f32 reference"

    print("KERNEL_OK")
</pallas_src>

<mosaic_0001>
module attributes {stable_mosaic.version = 11 : i64} {
  func.func @lstm_kernel(%arg0: memref<64x16xf32, #tpu.memory_space<vmem>>, %arg1: memref<8x32xf32, #tpu.memory_space<vmem>>, %arg2: memref<8x32xf32, #tpu.memory_space<vmem>>, %arg3: memref<16x128xf32, #tpu.memory_space<vmem>>, %arg4: memref<32x128xf32, #tpu.memory_space<vmem>>, %arg5: memref<1x128xf32, #tpu.memory_space<vmem>>, %arg6: memref<32x128xf32, #tpu.memory_space<vmem>>, %arg7: memref<1x128xf32, #tpu.memory_space<vmem>>, %arg8: memref<64x128xf32, #tpu.memory_space<vmem>>, %arg9: memref<8x32xf32, #tpu.memory_space<vmem>>, %arg10: memref<8x32xf32, #tpu.memory_space<vmem>>, %arg11: memref<64x128xf32, #tpu.memory_space<vmem>>, %arg12: memref<64x32xf32, #tpu.memory_space<vmem>>) attributes {dimension_semantics = [], scalar_prefetch = 0 : i64, scratch_operands = 2 : i64, tpu.core_type = #tpu.core_type<tc>} {
    %c0 = arith.constant 0 : index
    %c0_0 = arith.constant 0 : index
    %0 = vector.load %arg0[%c0, %c0_0] : memref<64x16xf32, #tpu.memory_space<vmem>>, vector<64x16xf32>
    %c0_1 = arith.constant 0 : index
    %c0_2 = arith.constant 0 : index
    %1 = vector.load %arg3[%c0_1, %c0_2] : memref<16x128xf32, #tpu.memory_space<vmem>>, vector<16x128xf32>
    %cst = arith.constant dense<0.000000e+00> : vector<64x128xf32>
    %2 = tpu.matmul %0, %1, %cst {dimension_numbers = #tpu.dot_dimension_numbers<[1], [0], [0], [1], [0, 0, 1, 1], [], []>} : vector<64x16xf32>, vector<16x128xf32>, vector<64x128xf32> -> vector<64x128xf32>
    %c0_3 = arith.constant 0 : index
    %c0_4 = arith.constant 0 : index
    %3 = vector.load %arg5[%c0_3, %c0_4] : memref<1x128xf32, #tpu.memory_space<vmem>>, vector<1x128xf32>
    %4 = vector.broadcast %3 : vector<1x128xf32> to vector<64x128xf32>
    %5 = arith.addf %2, %4 : vector<64x128xf32>
    %c0_5 = arith.constant 0 : index
    %c0_6 = arith.constant 0 : index
    %6 = vector.load %arg11[%c0_5, %c0_6] : memref<64x128xf32, #tpu.memory_space<vmem>>, vector<64x128xf32>
    tpu.vector_store %arg11[%c0_5, %c0_6], %5 {strides = array<i32>} : memref<64x128xf32, #tpu.memory_space<vmem>>, vector<64x128xf32>,
    %c0_7 = arith.constant 0 : index
    %c0_8 = arith.constant 0 : index
    %7 = vector.load %arg4[%c0_7, %c0_8] : memref<32x128xf32, #tpu.memory_space<vmem>>, vector<32x128xf32>
    %c0_9 = arith.constant 0 : index
    %c0_10 = arith.constant 0 : index
    %8 = vector.load %arg1[%c0_9, %c0_10] : memref<8x32xf32, #tpu.memory_space<vmem>>, vector<8x32xf32>
    %c0_11 = arith.constant 0 : index
    %c0_12 = arith.constant 0 : index
    %9 = vector.load %arg2[%c0_11, %c0_12] : memref<8x32xf32, #tpu.memory_space<vmem>>, vector<8x32xf32>
    %c0_i32 = arith.constant 0 : i32
    %c8_i32 = arith.constant 8 : i32
    %10 = arith.muli %c0_i32, %c8_i32 : i32
    %11 = tpu.assume_multiple %10, 8 : i32
    %12 = arith.index_cast %11 : i32 to index
    %c0_13 = arith.constant 0 : index
    %13 = vector.load %arg11[%12, %c0_13] : memref<64x128xf32, #tpu.memory_space<vmem>>, vector<8x128xf32>
    %cst_14 = arith.constant dense<0.000000e+00> : vector<8x128xf32>
    %14 = tpu.matmul %8, %7, %cst_14 {dimension_numbers = #tpu.dot_dimension_numbers<[1], [0], [0], [1], [0, 0, 1, 1], [], []>} : vector<8x32xf32>, vector<32x128xf32>, vector<8x128xf32> -> vector<8x128xf32>
    %15 = arith.addf %13, %14 : vector<8x128xf32>
    %16 = vector.extract_strided_slice %15 {offsets = [0, 0], sizes = [8, 96], strides = [1, 1]} : vector<8x128xf32> to vector<8x96xf32>
    %17 = arith.negf %16 : vector<8x96xf32>
    %18 = math.exp %17 : vector<8x96xf32>
    %cst_15 = arith.constant 1.000000e+00 : f32
    %19 = vector.broadcast %cst_15 : f32 to vector<8x96xf32>
    %20 = arith.addf %19, %18 : vector<8x96xf32>
    %21 = arith.divf %19, %20 : vector<8x96xf32>
    %22 = vector.extract_strided_slice %21 {offsets = [0, 0], sizes = [8, 32], strides = [1, 1]} : vector<8x96xf32> to vector<8x32xf32>
    %23 = vector.extract_strided_slice %21 {offsets = [0, 32], sizes = [8, 32], strides = [1, 1]} : vector<8x96xf32> to vector<8x32xf32>
    %24 = vector.extract_strided_slice %21 {offsets = [0, 64], sizes = [8, 32], strides = [1, 1]} : vector<8x96xf32> to vector<8x32xf32>
    %25 = vector.extract_strided_slice %15 {offsets = [0, 96], sizes = [8, 32], strides = [1, 1]} : vector<8x128xf32> to vector<8x32xf32>
    %26 = math.tanh %25 : vector<8x32xf32>
    %27 = arith.mulf %23, %9 : vector<8x32xf32>
    %28 = arith.mulf %22, %26 : vector<8x32xf32>
    %29 = arith.addf %27, %28 : vector<8x32xf32>
    %30 = math.tanh %29 : vector<8x32xf32>
    %31 = arith.mulf %24, %30 : vector<8x32xf32>
    %32 = arith.index_cast %11 : i32 to index
    %c0_16 = arith.constant 0 : index
    %33 = vector.load %arg12[%32, %c0_16] : memref<64x32xf32, #tpu.memory_space<vmem>>, vector<8x32xf32>
    tpu.vector_store %arg12[%32, %c0_16], %31 {strides = array<i32>} : memref<64x32xf32, #tpu.memory_space<vmem>>, vector<8x32xf32>,
    %c1_i32 = arith.constant 1 : i32
    %c8_i32_17 = arith.constant 8 : i32
    %34 = arith.muli %c1_i32, %c8_i32_17 : i32
    %35 = tpu.assume_multiple %34, 8 : i32
    %36 = arith.index_cast %35 : i32 to index
    %c0_18 = arith.constant 0 : index
    %37 = vector.load %arg11[%36, %c0_18] : memref<64x128xf32, #tpu.memory_space<vmem>>, vector<8x128xf32>
    %cst_19 = arith.constant dense<0.000000e+00> : vector<8x128xf32>
    %38 = tpu.matmul %31, %7, %cst_19 {dimension_numbers = #tpu.dot_dimension_numbers<[1], [0], [0], [1], [0, 0, 1, 1], [], []>} : vector<8x32xf32>, vector<32x128xf32>, vector<8x128xf32> -> vector<8x128xf32>
    %39 = arith.addf %37, %38 : vector<8x128xf32>
    %40 = vector.extract_strided_slice %39 {offsets = [0, 0], sizes = [8, 96], strides = [1, 1]} : vector<8x128xf32> to vector<8x96xf32>
    %41 = arith.negf %40 : vector<8x96xf32>
    %42 = math.exp %41 : vector<8x96xf32>
    %cst_20 = arith.constant 1.000000e+00 : f32
    %43 = vector.broadcast %cst_20 : f32 to vector<8x96xf32>
    %44 = arith.addf %43, %42 : vector<8x96xf32>
    %45 = arith.divf %43, %44 : vector<8x96xf32>
    %46 = vector.extract_strided_slice %45 {offsets = [0, 0], sizes = [8, 32], strides = [1, 1]} : vector<8x96xf32> to vector<8x32xf32>
    %47 = vector.extract_strided_slice %45 {offsets = [0, 32], sizes = [8, 32], strides = [1, 1]} : vector<8x96xf32> to vector<8x32xf32>
    %48 = vector.extract_strided_slice %45 {offsets = [0, 64], sizes = [8, 32], strides = [1, 1]} : vector<8x96xf32> to vector<8x32xf32>
    %49 = vector.extract_strided_slice %39 {offsets = [0, 96], sizes = [8, 32], strides = [1, 1]} : vector<8x128xf32> to vector<8x32xf32>
    %50 = math.tanh %49 : vector<8x32xf32>
    %51 = arith.mulf %47, %29 : vector<8x32xf32>
    %52 = arith.mulf %46, %50 : vector<8x32xf32>
    %53 = arith.addf %51, %52 : vector<8x32xf32>
    %54 = math.tanh %53 : vector<8x32xf32>
    %55 = arith.mulf %48, %54 : vector<8x32xf32>
    %56 = arith.index_cast %35 : i32 to index
    %c0_21 = arith.constant 0 : index
    %57 = vector.load %arg12[%56, %c0_21] : memref<64x32xf32, #tpu.memory_space<vmem>>, vector<8x32xf32>
    tpu.vector_store %arg12[%56, %c0_21], %55 {strides = array<i32>} : memref<64x32xf32, #tpu.memory_space<vmem>>, vector<8x32xf32>,
    %c2_i32 = arith.constant 2 : i32
    %c8_i32_22 = arith.constant 8 : i32
    %58 = arith.muli %c2_i32, %c8_i32_22 : i32
    %59 = tpu.assume_multiple %58, 8 : i32
    %60 = arith.index_cast %59 : i32 to index
    %c0_23 = arith.constant 0 : index
    %61 = vector.load %arg11[%60, %c0_23] : memref<64x128xf32, #tpu.memory_space<vmem>>, vector<8x128xf32>
    %cst_24 = arith.constant dense<0.000000e+00> : vector<8x128xf32>
    %62 = tpu.matmul %55, %7, %cst_24 {dimension_numbers = #tpu.dot_dimension_numbers<[1], [0], [0], [1], [0, 0, 1, 1], [], []>} : vector<8x32xf32>, vector<32x128xf32>, vector<8x128xf32> -> vector<8x128xf32>
    %63 = arith.addf %61, %62 : vector<8x128xf32>
    %64 = vector.extract_strided_slice %63 {offsets = [0, 0], sizes = [8, 96], strides = [1, 1]} : vector<8x128xf32> to vector<8x96xf32>
    %65 = arith.negf %64 : vector<8x96xf32>
    %66 = math.exp %65 : vector<8x96xf32>
    %cst_25 = arith.constant 1.000000e+00 : f32
    %67 = vector.broadcast %cst_25 : f32 to vector<8x96xf32>
    %68 = arith.addf %67, %66 : vector<8x96xf32>
    %69 = arith.divf %67, %68 : vector<8x96xf32>
    %70 = vector.extract_strided_slice %69 {offsets = [0, 0], sizes = [8, 32], strides = [1, 1]} : vector<8x96xf32> to vector<8x32xf32>
    %71 = vector.extract_strided_slice %69 {offsets = [0, 32], sizes = [8, 32], strides = [1, 1]} : vector<8x96xf32> to vector<8x32xf32>
    %72 = vector.extract_strided_slice %69 {offsets = [0, 64], sizes = [8, 32], strides = [1, 1]} : vector<8x96xf32> to vector<8x32xf32>
    %73 = vector.extract_strided_slice %63 {offsets = [0, 96], sizes = [8, 32], strides = [1, 1]} : vector<8x128xf32> to vector<8x32xf32>
    %74 = math.tanh %73 : vector<8x32xf32>
    %75 = arith.mulf %71, %53 : vector<8x32xf32>
    %76 = arith.mulf %70, %74 : vector<8x32xf32>
    %77 = arith.addf %75, %76 : vector<8x32xf32>
    %78 = math.tanh %77 : vector<8x32xf32>
    %79 = arith.mulf %72, %78 : vector<8x32xf32>
    %80 = arith.index_cast %59 : i32 to index
    %c0_26 = arith.constant 0 : index
    %81 = vector.load %arg12[%80, %c0_26] : memref<64x32xf32, #tpu.memory_space<vmem>>, vector<8x32xf32>
    tpu.vector_store %arg12[%80, %c0_26], %79 {strides = array<i32>} : memref<64x32xf32, #tpu.memory_space<vmem>>, vector<8x32xf32>,
    %c3_i32 = arith.constant 3 : i32
    %c8_i32_27 = arith.constant 8 : i32
    %82 = arith.muli %c3_i32, %c8_i32_27 : i32
    %83 = tpu.assume_multiple %82, 8 : i32
    %84 = arith.index_cast %83 : i32 to index
    %c0_28 = arith.constant 0 : index
    %85 = vector.load %arg11[%84, %c0_28] : memref<64x128xf32, #tpu.memory_space<vmem>>, vector<8x128xf32>
    %cst_29 = arith.constant dense<0.000000e+00> : vector<8x128xf32>
    %86 = tpu.matmul %79, %7, %cst_29 {dimension_numbers = #tpu.dot_dimension_numbers<[1], [0], [0], [1], [0, 0, 1, 1], [], []>} : vector<8x32xf32>, vector<32x128xf32>, vector<8x128xf32> -> vector<8x128xf32>
    %87 = arith.addf %85, %86 : vector<8x128xf32>
    %88 = vector.extract_strided_slice %87 {offsets = [0, 0], sizes = [8, 96], strides = [1, 1]} : vector<8x128xf32> to vector<8x96xf32>
    %89 = arith.negf %88 : vector<8x96xf32>
    %90 = math.exp %89 : vector<8x96xf32>
    %cst_30 = arith.constant 1.000000e+00 : f32
    %91 = vector.broadcast %cst_30 : f32 to vector<8x96xf32>
    %92 = arith.addf %91, %90 : vector<8x96xf32>
    %93 = arith.divf %91, %92 : vector<8x96xf32>
    %94 = vector.extract_strided_slice %93 {offsets = [0, 0], sizes = [8, 32], strides = [1, 1]} : vector<8x96xf32> to vector<8x32xf32>
    %95 = vector.extract_strided_slice %93 {offsets = [0, 32], sizes = [8, 32], strides = [1, 1]} : vector<8x96xf32> to vector<8x32xf32>
    %96 = vector.extract_strided_slice %93 {offsets = [0, 64], sizes = [8, 32], strides = [1, 1]} : vector<8x96xf32> to vector<8x32xf32>
    %97 = vector.extract_strided_slice %87 {offsets = [0, 96], sizes = [8, 32], strides = [1, 1]} : vector<8x128xf32> to vector<8x32xf32>
    %98 = math.tanh %97 : vector<8x32xf32>
    %99 = arith.mulf %95, %77 : vector<8x32xf32>
    %100 = arith.mulf %94, %98 : vector<8x32xf32>
    %101 = arith.addf %99, %100 : vector<8x32xf32>
    %102 = math.tanh %101 : vector<8x32xf32>
    %103 = arith.mulf %96, %102 : vector<8x32xf32>
    %104 = arith.index_cast %83 : i32 to index
    %c0_31 = arith.constant 0 : index
    %105 = vector.load %arg12[%104, %c0_31] : memref<64x32xf32, #tpu.memory_space<vmem>>, vector<8x32xf32>
    tpu.vector_store %arg12[%104, %c0_31], %103 {strides = array<i32>} : memref<64x32xf32, #tpu.memory_space<vmem>>, vector<8x32xf32>,
    %c4_i32 = arith.constant 4 : i32
    %c8_i32_32 = arith.constant 8 : i32
    %106 = arith.muli %c4_i32, %c8_i32_32 : i32
    %107 = tpu.assume_multiple %106, 8 : i32
    %108 = arith.index_cast %107 : i32 to index
    %c0_33 = arith.constant 0 : index
    %109 = vector.load %arg11[%108, %c0_33] : memref<64x128xf32, #tpu.memory_space<vmem>>, vector<8x128xf32>
    %cst_34 = arith.constant dense<0.000000e+00> : vector<8x128xf32>
    %110 = tpu.matmul %103, %7, %cst_34 {dimension_numbers = #tpu.dot_dimension_numbers<[1], [0], [0], [1], [0, 0, 1, 1], [], []>} : vector<8x32xf32>, vector<32x128xf32>, vector<8x128xf32> -> vector<8x128xf32>
    %111 = arith.addf %109, %110 : vector<8x128xf32>
    %112 = vector.extract_strided_slice %111 {offsets = [0, 0], sizes = [8, 96], strides = [1, 1]} : vector<8x128xf32> to vector<8x96xf32>
    %113 = arith.negf %112 : vector<8x96xf32>
    %114 = math.exp %113 : vector<8x96xf32>
    %cst_35 = arith.constant 1.000000e+00 : f32
    %115 = vector.broadcast %cst_35 : f32 to vector<8x96xf32>
    %116 = arith.addf %115, %114 : vector<8x96xf32>
    %117 = arith.divf %115, %116 : vector<8x96xf32>
    %118 = vector.extract_strided_slice %117 {offsets = [0, 0], sizes = [8, 32], strides = [1, 1]} : vector<8x96xf32> to vector<8x32xf32>
    %119 = vector.extract_strided_slice %117 {offsets = [0, 32], sizes = [8, 32], strides = [1, 1]} : vector<8x96xf32> to vector<8x32xf32>
    %120 = vector.extract_strided_slice %117 {offsets = [0, 64], sizes = [8, 32], strides = [1, 1]} : vector<8x96xf32> to vector<8x32xf32>
    %121 = vector.extract_strided_slice %111 {offsets = [0, 96], sizes = [8, 32], strides = [1, 1]} : vector<8x128xf32> to vector<8x32xf32>
    %122 = math.tanh %121 : vector<8x32xf32>
    %123 = arith.mulf %119, %101 : vector<8x32xf32>
    %124 = arith.mulf %118, %122 : vector<8x32xf32>
    %125 = arith.addf %123, %124 : vector<8x32xf32>
    %126 = math.tanh %125 : vector<8x32xf32>
    %127 = arith.mulf %120, %126 : vector<8x32xf32>
    %128 = arith.index_cast %107 : i32 to index
    %c0_36 = arith.constant 0 : index
    %129 = vector.load %arg12[%128, %c0_36] : memref<64x32xf32, #tpu.memory_space<vmem>>, vector<8x32xf32>
    tpu.vector_store %arg12[%128, %c0_36], %127 {strides = array<i32>} : memref<64x32xf32, #tpu.memory_space<vmem>>, vector<8x32xf32>,
    %c5_i32 = arith.constant 5 : i32
    %c8_i32_37 = arith.constant 8 : i32
    %130 = arith.muli %c5_i32, %c8_i32_37 : i32
    %131 = tpu.assume_multiple %130, 8 : i32
    %132 = arith.index_cast %131 : i32 to index
    %c0_38 = arith.constant 0 : index
    %133 = vector.load %arg11[%132, %c0_38] : memref<64x128xf32, #tpu.memory_space<vmem>>, vector<8x128xf32>
    %cst_39 = arith.constant dense<0.000000e+00> : vector<8x128xf32>
    %134 = tpu.matmul %127, %7, %cst_39 {dimension_numbers = #tpu.dot_dimension_numbers<[1], [0], [0], [1], [0, 0, 1, 1], [], []>} : vector<8x32xf32>, vector<32x128xf32>, vector<8x128xf32> -> vector<8x128xf32>
    %135 = arith.addf %133, %134 : vector<8x128xf32>
    %136 = vector.extract_strided_slice %135 {offsets = [0, 0], sizes = [8, 96], strides = [1, 1]} : vector<8x128xf32> to vector<8x96xf32>
    %137 = arith.negf %136 : vector<8x96xf32>
    %138 = math.exp %137 : vector<8x96xf32>
    %cst_40 = arith.constant 1.000000e+00 : f32
    %139 = vector.broadcast %cst_40 : f32 to vector<8x96xf32>
    %140 = arith.addf %139, %138 : vector<8x96xf32>
    %141 = arith.divf %139, %140 : vector<8x96xf32>
    %142 = vector.extract_strided_slice %141 {offsets = [0, 0], sizes = [8, 32], strides = [1, 1]} : vector<8x96xf32> to vector<8x32xf32>
    %143 = vector.extract_strided_slice %141 {offsets = [0, 32], sizes = [8, 32], strides = [1, 1]} : vector<8x96xf32> to vector<8x32xf32>
    %144 = vector.extract_strided_slice %141 {offsets = [0, 64], sizes = [8, 32], strides = [1, 1]} : vector<8x96xf32> to vector<8x32xf32>
    %145 = vector.extract_strided_slice %135 {offsets = [0, 96], sizes = [8, 32], strides = [1, 1]} : vector<8x128xf32> to vector<8x32xf32>
    %146 = math.tanh %145 : vector<8x32xf32>
    %147 = arith.mulf %143, %125 : vector<8x32xf32>
    %148 = arith.mulf %142, %146 : vector<8x32xf32>
    %149 = arith.addf %147, %148 : vector<8x32xf32>
    %150 = math.tanh %149 : vector<8x32xf32>
    %151 = arith.mulf %144, %150 : vector<8x32xf32>
    %152 = arith.index_cast %131 : i32 to index
    %c0_41 = arith.constant 0 : index
    %153 = vector.load %arg12[%152, %c0_41] : memref<64x32xf32, #tpu.memory_space<vmem>>, vector<8x32xf32>
    tpu.vector_store %arg12[%152, %c0_41], %151 {strides = array<i32>} : memref<64x32xf32, #tpu.memory_space<vmem>>, vector<8x32xf32>,
    %c6_i32 = arith.constant 6 : i32
    %c8_i32_42 = arith.constant 8 : i32
    %154 = arith.muli %c6_i32, %c8_i32_42 : i32
    %155 = tpu.assume_multiple %154, 8 : i32
    %156 = arith.index_cast %155 : i32 to index
    %c0_43 = arith.constant 0 : index
    %157 = vector.load %arg11[%156, %c0_43] : memref<64x128xf32, #tpu.memory_space<vmem>>, vector<8x128xf32>
    %cst_44 = arith.constant dense<0.000000e+00> : vector<8x128xf32>
    %158 = tpu.matmul %151, %7, %cst_44 {dimension_numbers = #tpu.dot_dimension_numbers<[1], [0], [0], [1], [0, 0, 1, 1], [], []>} : vector<8x32xf32>, vector<32x128xf32>, vector<8x128xf32> -> vector<8x128xf32>
    %159 = arith.addf %157, %158 : vector<8x128xf32>
    %160 = vector.extract_strided_slice %159 {offsets = [0, 0], sizes = [8, 96], strides = [1, 1]} : vector<8x128xf32> to vector<8x96xf32>
    %161 = arith.negf %160 : vector<8x96xf32>
    %162 = math.exp %161 : vector<8x96xf32>
    %cst_45 = arith.constant 1.000000e+00 : f32
    %163 = vector.broadcast %cst_45 : f32 to vector<8x96xf32>
    %164 = arith.addf %163, %162 : vector<8x96xf32>
    %165 = arith.divf %163, %164 : vector<8x96xf32>
    %166 = vector.extract_strided_slice %165 {offsets = [0, 0], sizes = [8, 32], strides = [1, 1]} : vector<8x96xf32> to vector<8x32xf32>
    %167 = vector.extract_strided_slice %165 {offsets = [0, 32], sizes = [8, 32], strides = [1, 1]} : vector<8x96xf32> to vector<8x32xf32>
    %168 = vector.extract_strided_slice %165 {offsets = [0, 64], sizes = [8, 32], strides = [1, 1]} : vector<8x96xf32> to vector<8x32xf32>
    %169 = vector.extract_strided_slice %159 {offsets = [0, 96], sizes = [8, 32], strides = [1, 1]} : vector<8x128xf32> to vector<8x32xf32>
    %170 = math.tanh %169 : vector<8x32xf32>
    %171 = arith.mulf %167, %149 : vector<8x32xf32>
    %172 = arith.mulf %166, %170 : vector<8x32xf32>
    %173 = arith.addf %171, %172 : vector<8x32xf32>
    %174 = math.tanh %173 : vector<8x32xf32>
    %175 = arith.mulf %168, %174 : vector<8x32xf32>
    %176 = arith.index_cast %155 : i32 to index
    %c0_46 = arith.constant 0 : index
    %177 = vector.load %arg12[%176, %c0_46] : memref<64x32xf32, #tpu.memory_space<vmem>>, vector<8x32xf32>
    tpu.vector_store %arg12[%176, %c0_46], %175 {strides = array<i32>} : memref<64x32xf32, #tpu.memory_space<vmem>>, vector<8x32xf32>,
    %c7_i32 = arith.constant 7 : i32
    %c8_i32_47 = arith.constant 8 : i32
    %178 = arith.muli %c7_i32, %c8_i32_47 : i32
    %179 = tpu.assume_multiple %178, 8 : i32
    %180 = arith.index_cast %179 : i32 to index
    %c0_48 = arith.constant 0 : index
    %181 = vector.load %arg11[%180, %c0_48] : memref<64x128xf32, #tpu.memory_space<vmem>>, vector<8x128xf32>
    %cst_49 = arith.constant dense<0.000000e+00> : vector<8x128xf32>
    %182 = tpu.matmul %175, %7, %cst_49 {dimension_numbers = #tpu.dot_dimension_numbers<[1], [0], [0], [1], [0, 0, 1, 1], [], []>} : vector<8x32xf32>, vector<32x128xf32>, vector<8x128xf32> -> vector<8x128xf32>
    %183 = arith.addf %181, %182 : vector<8x128xf32>
    %184 = vector.extract_strided_slice %183 {offsets = [0, 0], sizes = [8, 96], strides = [1, 1]} : vector<8x128xf32> to vector<8x96xf32>
    %185 = arith.negf %184 : vector<8x96xf32>
    %186 = math.exp %185 : vector<8x96xf32>
    %cst_50 = arith.constant 1.000000e+00 : f32
    %187 = vector.broadcast %cst_50 : f32 to vector<8x96xf32>
    %188 = arith.addf %187, %186 : vector<8x96xf32>
    %189 = arith.divf %187, %188 : vector<8x96xf32>
    %190 = vector.extract_strided_slice %189 {offsets = [0, 0], sizes = [8, 32], strides = [1, 1]} : vector<8x96xf32> to vector<8x32xf32>
    %191 = vector.extract_strided_slice %189 {offsets = [0, 32], sizes = [8, 32], strides = [1, 1]} : vector<8x96xf32> to vector<8x32xf32>
    %192 = vector.extract_strided_slice %189 {offsets = [0, 64], sizes = [8, 32], strides = [1, 1]} : vector<8x96xf32> to vector<8x32xf32>
    %193 = vector.extract_strided_slice %183 {offsets = [0, 96], sizes = [8, 32], strides = [1, 1]} : vector<8x128xf32> to vector<8x32xf32>
    %194 = math.tanh %193 : vector<8x32xf32>
    %195 = arith.mulf %191, %173 : vector<8x32xf32>
    %196 = arith.mulf %190, %194 : vector<8x32xf32>
    %197 = arith.addf %195, %196 : vector<8x32xf32>
    %198 = math.tanh %197 : vector<8x32xf32>
    %199 = arith.mulf %192, %198 : vector<8x32xf32>
    %200 = arith.index_cast %179 : i32 to index
    %c0_51 = arith.constant 0 : index
    %201 = vector.load %arg12[%200, %c0_51] : memref<64x32xf32, #tpu.memory_space<vmem>>, vector<8x32xf32>
    tpu.vector_store %arg12[%200, %c0_51], %199 {strides = array<i32>} : memref<64x32xf32, #tpu.memory_space<vmem>>, vector<8x32xf32>,
    %c8_i32_52 = arith.constant 8 : i32
    %c0_53 = arith.constant 0 : index
    %c0_54 = arith.constant 0 : index
    %202 = vector.load %arg9[%c0_53, %c0_54] : memref<8x32xf32, #tpu.memory_space<vmem>>, vector<8x32xf32>
    tpu.vector_store %arg9[%c0_53, %c0_54], %199 {strides = array<i32>} : memref<8x32xf32, #tpu.memory_space<vmem>>, vector<8x32xf32>,
    %c0_55 = arith.constant 0 : index
    %c0_56 = arith.constant 0 : index
    %203 = vector.load %arg10[%c0_55, %c0_56] : memref<8x32xf32, #tpu.memory_space<vmem>>, vector<8x32xf32>
    tpu.vector_store %arg10[%c0_55, %c0_56], %197 {strides = array<i32>} : memref<8x32xf32, #tpu.memory_space<vmem>>, vector<8x32xf32>,
    %c0_57 = arith.constant 0 : index
    %c0_58 = arith.constant 0 : index
    %204 = vector.load %arg12[%c0_57, %c0_58] : memref<64x32xf32, #tpu.memory_space<vmem>>, vector<64x32xf32>
    %c0_59 = arith.constant 0 : index
    %c0_60 = arith.constant 0 : index
    %205 = vector.load %arg6[%c0_59, %c0_60] : memref<32x128xf32, #tpu.memory_space<vmem>>, vector<32x128xf32>
    %cst_61 = arith.constant dense<0.000000e+00> : vector<64x128xf32>
    %206 = tpu.matmul %204, %205, %cst_61 {dimension_numbers = #tpu.dot_dimension_numbers<[1], [0], [0], [1], [0, 0, 1, 1], [], []>} : vector<64x32xf32>, vector<32x128xf32>, vector<64x128xf32> -> vector<64x128xf32>
    %c0_62 = arith.constant 0 : index
    %c0_63 = arith.constant 0 : index
    %207 = vector.load %arg7[%c0_62, %c0_63] : memref<1x128xf32, #tpu.memory_space<vmem>>, vector<1x128xf32>
    %208 = vector.broadcast %207 : vector<1x128xf32> to vector<64x128xf32>
    %209 = arith.addf %206, %208 : vector<64x128xf32>
    %c0_64 = arith.constant 0 : index
    %c0_65 = arith.constant 0 : index
    %210 = vector.load %arg8[%c0_64, %c0_65] : memref<64x128xf32, #tpu.memory_space<vmem>>, vector<64x128xf32>
    tpu.vector_store %arg8[%c0_64, %c0_65], %209 {strides = array<i32>} : memref<64x128xf32, #tpu.memory_space<vmem>>, vector<64x128xf32>,
    return
  }
}

</mosaic_0001>

<bundles_post_ra>
// kernel: lstm_forward.1
= control target key start
LH: loop header
LB: loop body
LE: loop exit
PB: predicated region body
PF: predicated region fallthrough
CT: control target
= control target key end

     0   :  { %vm49_vm0 = vcmask 130048   ;;  %v1563_v10 = vmov 0.0|0.0   ;;  %vm1564_vm1 = vmmov 0   ;;  %v1565_v16 = vmov 0.0   ;;  %s1566_s18 = smov 32   ;;  %s1875_s3 = inlined_call_operand.vmem [shape: f32[16,128], index: 3, kind: input, shape index: {}]   ;;  %s1876_s0 = inlined_call_operand.vmem [shape: f32[64,16], index: 0, kind: input, shape index: {}]   ;;  %s1877_s4 = inlined_call_operand.vmem [shape: f32[32,128], index: 4, kind: input, shape index: {}]   ;;  %s1878_s1 = inlined_call_operand.vmem [shape: f32[8,32], index: 1, kind: input, shape index: {}]   ;;  %s1879_s5 = inlined_call_operand.vmem [shape: f32[1,128], index: 5, kind: input, shape index: {}]   ;;  %s1880_s2 = inlined_call_operand.vmem [shape: f32[8,32], index: 2, kind: input, shape index: {}]   ;;  %s1881_s6 = inlined_call_operand.vmem [shape: f32[32,128], index: 6, kind: input, shape index: {}]   ;;  %s1882_s7 = inlined_call_operand.vmem [shape: f32[1,128], index: 7, kind: input, shape index: {}]   ;;  %s1883_s8 = inlined_call_operand.vmem [shape: f32[64,128], index: 8, kind: output, shape index: {0}]   ;;  %s1884_s10 = inlined_call_operand.vmem [shape: f32[8,32], index: 10, kind: output, shape index: {2}]   ;;  %s1885_s9 = inlined_call_operand.vmem [shape: f32[8,32], index: 9, kind: output, shape index: {1}]  }
   0x1   :  { %v40_v0 = vld [vmem:[%s1875_s3] sm:$0xff]  ;;  %v41_v1 = vld [vmem:[%s1875_s3 + $0x8] sm:$0xff]  ;;  %v38_v11 = vld [vmem:[%s1876_s0 + $0x30] sm:$0xff]  ;;  %vm194_vm2 = vcmask 261120  }
   0x2   :  { %v36_v2 = vld [vmem:[%s1876_s0 + $0x20] sm:$0xff]  ;;  %v1431_v3 = vpack.c.bf16 %v41_v1, %v40_v0  ;;  %v188_v5 = vld [vmem:[%s1877_s4 + $0x8] sm:$0xff]  ;;  %v189_v12 = vld [vmem:[%s1877_s4 + $0x10] sm:$0xff] }
   0x3   :  { %1317 = vmatprep.mubr.msk.f32.mxu1 %vm49_vm0, %v36_v2  ;;  %v187_v4 = vld [vmem:[%s1877_s4] sm:$0xff]  ;;  %v37_v7 = vld [vmem:[%s1876_s0 + $0x28] sm:$0xff]  ;;  %v190_v13 = vld [vmem:[%s1877_s4 + $0x18] sm:$0xff] }
   0x4   :  { %v32_v6 = vld [vmem:[%s1876_s0] sm:$0xff]  ;;  %1491 = vmatprep.subr.bf16.mxu1 %v1431_v3  ;;  %1432 = vmatprep.subr.bf16.mxu0 %v1431_v3  ;;  %v1646_v8 = vpack.c.bf16 %v188_v5, %v187_v4  ;;  %v33_v9 = vld [vmem:[%s1876_s0 + $0x8] sm:$0xff]  ;;  %v39_v14 = vld [vmem:[%s1876_s0 + $0x38] sm:$0xff]  ;;  %v1670_v15 = vpack.c.bf16 %v190_v13, %v189_v12 }
   0x5   :  { %1492 = vmatpush3.bf16.msra.mxu1 %v1431_v3  ;;  %1434 = vmatpush3.bf16.msra.mxu0 %v1431_v3  ;;  %v191_v17 = vld [vmem:[%s1878_s1] sm:$0xff]  ;;  %v34_v59 = vld [vmem:[%s1876_s0 + $0x10] sm:$0xff]  ;;  %v35_v60 = vld [vmem:[%s1876_s0 + $0x18] sm:$0xff] }
   0x6   :  { %1435 = vmatprep.subr.bf16.mxu1 %v1563_v10  ;;  %1311 = vmatprep.mubr.msk.f32.mxu0 %vm49_vm0, %v32_v6  ;;  %v1699_v22 = vld [vmem:[%s1879_s5] ss:$0 sm:$0xff]  ;;  %s1568_s5 = smov 96  }
   0x7   :  { %1447 = vmatprep.subr.bf16.mxu0 %v1563_v10  ;;  %v192_v30 = vld [vmem:[%s1880_s2] sm:$0xff]  ;;  %s1567_s2 = smov 64  }
   0x8   :  { %1318 = vmatmul.mubr.msk.f32.vlgmr.msra.gmra.mrb[0].mxu1 %vm49_vm0, %v37_v7  ;;  %1312 = vmatmul.mubr.msk.f32.vlgmr.msra.gmra.mrb[0].mxu0 %vm49_vm0, %v33_v9 }
   0x9   :  { %1437 = vmatpush3.bf16.msra.mxu1 %v1646_v8  ;;  %1320 = vmatprep.mubr.msk.f32.mxu1 %vm49_vm0, %v38_v11 }
   0xa   :  { %1438 = vmatprep.subr.bf16.mxu1 %v1563_v10  ;;  %1449 = vmatpush3.bf16.msra.mxu0 %v1646_v8 }
   0xb   :  { %1450 = vmatprep.subr.bf16.mxu0 %v1563_v10  ;;  %1314 = vmatprep.mubr.msk.f32.mxu0 %vm49_vm0, %v34_v59 }
   0xc   :  { %1321 = vmatmul.mubr.msk.f32.gmra.mrb[2].mxu1 %vm49_vm0, %v39_v14  ;;  %1315 = vmatmul.mubr.msk.f32.gmra.mrb[2].mxu0 %vm49_vm0, %v35_v60 }
   0xd   :  { %1440 = vmatpush3.bf16.msra.mxu1 %v1670_v15  ;;  %1331 = vmatprep.mubr.msk.f32.mxu1 %vm1564_vm1, %v1565_v16 }
   0xe   :  { %1441 = vmatprep.subr.bf16.mxu1 %v1563_v10  ;;  %1452 = vmatpush3.bf16.msra.mxu0 %v1670_v15 }
   0xf   :  { %1459 = vmatprep.subr.bf16.mxu0 %v1563_v10  ;;  %1353 = vmatprep.mubr.msk.f32.mxu0 %vm1564_vm1, %v1565_v16 }
  0x10   :  { %1332 = vmatmul.mubr.msk.f32.vlgmr.msra.gmra.mrb[4].mxu1 %vm194_vm2, %v191_v17 }
  0x11   :  { %1443 = vmatpush3.bf16.msra.mxu1 %v1646_v8  ;;  %1342 = vmatprep.mubr.msk.f32.mxu1 %vm1564_vm1, %v1565_v16 }
  0x12   :  { %1444 = vmatprep.subr.bf16.mxu1 %v1563_v10 }
  0x15   :  { %1446 = vmatpush3.bf16.msra.mxu1 %v1670_v15 }
  0x16   :  { %1453 = vmatprep.subr.bf16.mxu1 %v1563_v10 }
  0xdb   :  { %v1692_v18 = vpop.f32.mrb[0].mxu1  ;;  %v1313_v19 = vpop.f32.mrb[0].mxu0 }
  0xdc   :  { %v1694_v20 = vpop.f32.mrb[1].mxu1  ;;  %v140_v21 = vpop.f32.mrb[1].mxu0  ;;  %v146_v45 = vadd.f32 %v1313_v19, %v1699_v22 }
  0xdd   :  { %v141_v25 = vadd.f32 %v1699_v22, %v140_v21 }
  0xdf   :  { %v1701_v23 = vpop.f32.mrb[2].mxu1  ;;  %v1316_v0 = vpop.f32.mrb[2].mxu0 }
  0xe0   :  { %v1703_v24 = vpop.f32.mrb[3].mxu1  ;;  %v150_v1 = vpop.f32.mrb[3].mxu0 }
  0xe1   :  { %v151_v3 = vadd.f32 %v1699_v22, %v150_v1  ;;  %v166_v1 = vadd.f32 %v1692_v18, %v1699_v22 }
  0xe3   :  { %v264_v26 = vpop.f32.mrb[4].mxu1 }
  0xe4   :  { %v268_v27 = vadd.f32 %v264_v26, %v141_v25  ;;  %v1333_v28 = vpop.f32.mrb[5].mxu1 }
  0xe6   :  { %1499 = vtanh.f32 %v268_v27  ;;  %v1221_v31 = vmul.f32 -1.442695, %v268_v27 }
  0xe8   :  { %1501 = vpow2.f32 %v1221_v31 }
  0xf0   :  { %v1500_v29 = vpop.eup %1499 }
  0xf1   :  { %282 = vrot.lane.b32.xlu0 %v1500_v29, %s1566_s18 }
  0xf2   :  { %v1502_v32 = vpop.eup %1501 }
  0xf3   :  { %v272_v33 = vadd.f32 1.0, %v1502_v32 }
  0xf5   :  { %277 = vrot.lane.b32.xlu0 %v192_v30, %s1566_s18  ;;  %1503 = vrcp.f32 %v272_v33  ;;  %v156_v30 = vadd.f32 %v1316_v0, %v1699_v22 }
  0xff   :  { %v1504_v34 = vpop.eup %1503 }
 0x163   :  { %v283_v35 = vpop.permute.xlu0 %282 }
 0x164   :  { %v285_v36 = vmul.f32 %v1504_v34, %v283_v35 }
 0x166   :  { %287 = vrot.lane.b32.xlu1 %v285_v36, %s1566_s18 }
 0x167   :  { %v278_v37 = vpop.permute.xlu0 %277 }
 0x168   :  { %v280_v38 = vmul.f32 %v1504_v34, %v278_v37 }
 0x1d8   :  { %v288_v39 = vpop.permute.xlu1 %287 }
 0x1d9   :  { %v290_v40 = vadd.f32 %v288_v39, %v280_v38 }
 0x1db   :  { %1505 = vtanh.f32 %v290_v40 }
 0x1e5   :  { %v1506_v41 = vpop.eup %1505 }
 0x1e6   :  { %293 = vrot.lane.b32.xlu1 %v1506_v41, %s1566_s18 }
 0x258   :  { %v294_v42 = vpop.permute.xlu1 %293 }
 0x259   :  { %v296_v43 = vmul.f32 %v1504_v34, %v294_v42 }
 0x25b   :  { %298 = vrot.lane.b32.xlu0 %v296_v43, %s1567_s2 }
 0x2cd   :  { %v299_v44 = vpop.permute.xlu0 %298 }
 0x2ce   :  { %301 = vst.msk [vmem:[#allocation3] sm:$0xff] %vm194_vm2, %v299_v44  ;;  %1343 = vmatmul.mubr.msk.f32.vlgmr.msra.gmra.mrb[6].mxu1 %vm194_vm2, %v299_v44 }
 0x2cf   :  { %1455 = vmatpush3.bf16.msra.mxu1 %v1646_v8  ;;  %1364 = vmatprep.mubr.msk.f32.mxu1 %vm1564_vm1, %v1565_v16 }
 0x2d0   :  { %1456 = vmatprep.subr.bf16.mxu1 %v1563_v10 }
 0x2d3   :  { %1458 = vmatpush3.bf16.msra.mxu1 %v1670_v15 }
 0x2d4   :  { %1465 = vmatprep.subr.bf16.mxu1 %v1563_v10 }
 0x3a1   :  { %v372_v46 = vpop.f32.mrb[6].mxu1 }
 0x3a2   :  { %v376_v47 = vadd.f32 %v372_v46, %v146_v45  ;;  %v1344_v48 = vpop.f32.mrb[7].mxu1 }
 0x3a3   :  { %v161_v48 = vadd.f32 %v1699_v22, %v1694_v20 }
 0x3a4   :  { %1507 = vtanh.f32 %v376_v47  ;;  %v1223_v50 = vmul.f32 -1.442695, %v376_v47 }
 0x3a6   :  { %1509 = vpow2.f32 %v1223_v50 }
 0x3ae   :  { %v1508_v49 = vpop.eup %1507 }
 0x3af   :  { %386 = vrot.lane.b32.xlu1 %v1508_v49, %s1566_s18 }
 0x3b0   :  { %v1510_v51 = vpop.eup %1509 }
 0x3b1   :  { %v380_v52 = vadd.f32 1.0, %v1510_v51 }
 0x3b3   :  { %1511 = vrcp.f32 %v380_v52 }
 0x3bd   :  { %v1512_v53 = vpop.eup %1511 }
 0x3be   :  { %v384_v56 = vmul.f32 %v1512_v53, %v290_v40 }
 0x421   :  { %v387_v54 = vpop.permute.xlu1 %386 }
 0x422   :  { %v389_v55 = vmul.f32 %v1512_v53, %v387_v54 }
 0x424   :  { %391 = vrot.lane.b32.xlu0 %v389_v55, %s1566_s18 }
 0x496   :  { %v392_v57 = vpop.permute.xlu0 %391 }
 0x497   :  { %v394_v58 = vadd.f32 %v392_v57, %v384_v56 }
 0x499   :  { %1513 = vtanh.f32 %v394_v58 }
 0x4a3   :  { %v1514_v61 = vpop.eup %1513 }
 0x4a4   :  { %397 = vrot.lane.b32.xlu1 %v1514_v61, %s1566_s18 }
 0x516   :  { %v398_v62 = vpop.permute.xlu1 %397 }
 0x517   :  { %v400_v63 = vmul.f32 %v1512_v53, %v398_v62 }
 0x519   :  { %402 = vrot.lane.b32.xlu0 %v400_v63, %s1567_s2 }
 0x58b   :  { %v403_v2 = vpop.permute.xlu0 %402 }
 0x58c   :  { %406 = vst.msk [vmem:[#allocation3 + $0x8] sm:$0xff] %vm194_vm2, %v403_v2  ;;  %1354 = vmatmul.mubr.msk.f32.vlgmr.msra.gmra.mrb[4].mxu0 %vm194_vm2, %v403_v2 }
 0x58d   :  { %1461 = vmatpush3.bf16.msra.mxu0 %v1646_v8  ;;  %1375 = vmatprep.mubr.msk.f32.mxu0 %vm1564_vm1, %v1565_v16 }
 0x58e   :  { %1462 = vmatprep.subr.bf16.mxu0 %v1563_v10 }
 0x591   :  { %1464 = vmatpush3.bf16.msra.mxu0 %v1670_v15 }
 0x592   :  { %1471 = vmatprep.subr.bf16.mxu0 %v1563_v10 }
 0x65f   :  { %v477_v4 = vpop.f32.mrb[4].mxu0 }
 0x660   :  { %v481_v5 = vadd.f32 %v477_v4, %v151_v3  ;;  %v1355_v6 = vpop.f32.mrb[5].mxu0 }
 0x662   :  { %1515 = vtanh.f32 %v481_v5  ;;  %v1225_v9 = vmul.f32 -1.442695, %v481_v5 }
 0x664   :  { %1517 = vpow2.f32 %v1225_v9 }
 0x66c   :  { %v1516_v7 = vpop.eup %1515 }
 0x66d   :  { %491 = vrot.lane.b32.xlu1 %v1516_v7, %s1566_s18 }
 0x66e   :  { %v1518_v11 = vpop.eup %1517 }
 0x66f   :  { %v485_v12 = vadd.f32 1.0, %v1518_v11 }
 0x671   :  { %1519 = vrcp.f32 %v485_v12  ;;  %v1051_v12 = vld [vmem:[%s1881_s6] sm:$0xff] }
 0x67b   :  { %v1520_v13 = vpop.eup %1519 }
 0x67c   :  { %v489_v19 = vmul.f32 %v1520_v13, %v394_v58 }
 0x6df   :  { %v492_v14 = vpop.permute.xlu1 %491 }
 0x6e0   :  { %v494_v17 = vmul.f32 %v1520_v13, %v492_v14 }
 0x6e2   :  { %496 = vrot.lane.b32.xlu0 %v494_v17, %s1566_s18 }
 0x754   :  { %v497_v21 = vpop.permute.xlu0 %496 }
 0x755   :  { %v499_v25 = vadd.f32 %v497_v21, %v489_v19 }
 0x757   :  { %1521 = vtanh.f32 %v499_v25 }
 0x761   :  { %v1522_v26 = vpop.eup %1521 }
 0x762   :  { %502 = vrot.lane.b32.xlu1 %v1522_v26, %s1566_s18  ;;  %v1054_v26 = vld [vmem:[%s1881_s6 + $0x18] sm:$0xff] }
 0x7d4   :  { %v503_v27 = vpop.permute.xlu1 %502 }
 0x7d5   :  { %v505_v28 = vmul.f32 %v1520_v13, %v503_v27  ;;  %v1052_v13 = vld [vmem:[%s1881_s6 + $0x8] sm:$0xff] }
 0x7d6   :  { %v1483_v14 = vpack.c.bf16 %v1052_v13, %v1051_v12 }
 0x7d7   :  { %507 = vrot.lane.b32.xlu0 %v505_v28, %s1567_s2 }
 0x849   :  { %v508_v29 = vpop.permute.xlu0 %507 }
 0x84a   :  { %511 = vst.msk [vmem:[#allocation3 + $0x10] sm:$0xff] %vm194_vm2, %v508_v29  ;;  %1365 = vmatmul.mubr.msk.f32.vlgmr.msra.gmra.mrb[8].mxu1 %vm194_vm2, %v508_v29  ;;  %v1043_v29 = vld [vmem:[#allocation3] sm:$0xff] }
 0x84b   :  { %1467 = vmatpush3.bf16.msra.mxu1 %v1646_v8  ;;  %1386 = vmatprep.mubr.msk.f32.mxu1 %vm1564_vm1, %v1565_v16 }
 0x84c   :  { %1468 = vmatprep.subr.bf16.mxu1 %v1563_v10 }
 0x84f   :  { %1470 = vmatpush3.bf16.msra.mxu1 %v1670_v15 }
 0x850   :  { %1477 = vmatprep.subr.bf16.mxu1 %v1563_v10 }
 0x91d   :  { %v582_v31 = vpop.f32.mrb[8].mxu1 }
 0x91e   :  { %v586_v32 = vadd.f32 %v582_v31, %v156_v30  ;;  %v1366_v33 = vpop.f32.mrb[9].mxu1  ;;  %v1044_v30 = vld [vmem:[#allocation3 + $0x8] sm:$0xff]  ;;  %v1045_v31 = vld [vmem:[#allocation3 + $0x10] sm:$0xff] }
 0x920   :  { %1523 = vtanh.f32 %v586_v32  ;;  %v1227_v35 = vmul.f32 -1.442695, %v586_v32 }
 0x922   :  { %1525 = vpow2.f32 %v1227_v35  ;;  %v171_v35 = vadd.f32 %v1699_v22, %v1703_v24 }
 0x92a   :  { %v1524_v34 = vpop.eup %1523 }
 0x92b   :  { %596 = vrot.lane.b32.xlu1 %v1524_v34, %s1566_s18 }
 0x92c   :  { %v1526_v36 = vpop.eup %1525 }
 0x92d   :  { %v590_v37 = vadd.f32 1.0, %v1526_v36 }
 0x92f   :  { %1527 = vrcp.f32 %v590_v37 }
 0x939   :  { %v1528_v38 = vpop.eup %1527 }
 0x93a   :  { %v594_v41 = vmul.f32 %v1528_v38, %v499_v25  ;;  %v1053_v25 = vld [vmem:[%s1881_s6 + $0x10] sm:$0xff] }
 0x93b   :  { %v1487_v27 = vpack.c.bf16 %v1054_v26, %v1053_v25 }
 0x99d   :  { %v597_v39 = vpop.permute.xlu1 %596 }
 0x99e   :  { %v599_v40 = vmul.f32 %v1528_v38, %v597_v39  ;;  %v1817_v39 = vld [vmem:[%s1882_s7] ss:$0 sm:$0xff] }
 0x9a0   :  { %601 = vrot.lane.b32.xlu0 %v599_v40, %s1566_s18 }
 0xa12   :  { %v602_v42 = vpop.permute.xlu0 %601 }
 0xa13   :  { %v604_v43 = vadd.f32 %v602_v42, %v594_v41 }
 0xa15   :  { %1529 = vtanh.f32 %v604_v43 }
 0xa1f   :  { %v1530_v44 = vpop.eup %1529 }
 0xa20   :  { %607 = vrot.lane.b32.xlu1 %v1530_v44, %s1566_s18 }
 0xa92   :  { %v608_v45 = vpop.permute.xlu1 %607 }
 0xa93   :  { %v610_v46 = vmul.f32 %v1528_v38, %v608_v45 }
 0xa95   :  { %612 = vrot.lane.b32.xlu0 %v610_v46, %s1567_s2 }
 0xb07   :  { %v613_v47 = vpop.permute.xlu0 %612 }
 0xb08   :  { %616 = vst.msk [vmem:[#allocation3 + $0x18] sm:$0xff] %vm194_vm2, %v613_v47  ;;  %1376 = vmatmul.mubr.msk.f32.vlgmr.msra.gmra.mrb[6].mxu0 %vm194_vm2, %v613_v47 }
 0xb09   :  { %1473 = vmatpush3.bf16.msra.mxu0 %v1646_v8  ;;  %1397 = vmatprep.mubr.msk.f32.mxu0 %vm1564_vm1, %v1565_v16 }
 0xb0a   :  { %1474 = vmatprep.subr.bf16.mxu0 %v1563_v10 }
 0xb0d   :  { %1476 = vmatpush3.bf16.msra.mxu0 %v1670_v15 }
 0xb0e   :  { %1484 = vmatprep.subr.bf16.mxu0 %v1483_v14 }
 0xb0f   :  { %v1046_v32 = vld [vmem:[#allocation3 + $0x18] sm:$0xff] }
 0xbdb   :  { %v687_v49 = vpop.f32.mrb[6].mxu0 }
 0xbdc   :  { %v691_v50 = vadd.f32 %v687_v49, %v161_v48  ;;  %v1377_v51 = vpop.f32.mrb[7].mxu0 }
 0xbde   :  { %1531 = vtanh.f32 %v691_v50  ;;  %v1229_v53 = vmul.f32 -1.442695, %v691_v50 }
 0xbe0   :  { %1533 = vpow2.f32 %v1229_v53 }
 0xbe8   :  { %v1532_v52 = vpop.eup %1531 }
 0xbe9   :  { %701 = vrot.lane.b32.xlu1 %v1532_v52, %s1566_s18 }
 0xbea   :  { %v1534_v54 = vpop.eup %1533 }
 0xbeb   :  { %v695_v55 = vadd.f32 1.0, %v1534_v54 }
 0xbed   :  { %1535 = vrcp.f32 %v695_v55 }
 0xbf7   :  { %v1536_v56 = vpop.eup %1535 }
 0xbf8   :  { %v699_v59 = vmul.f32 %v1536_v56, %v604_v43 }
 0xc5b   :  { %v702_v57 = vpop.permute.xlu1 %701 }
 0xc5c   :  { %v704_v58 = vmul.f32 %v1536_v56, %v702_v57 }
 0xc5e   :  { %706 = vrot.lane.b32.xlu0 %v704_v58, %s1566_s18 }
 0xcd0   :  { %v707_v60 = vpop.permute.xlu0 %706 }
 0xcd1   :  { %v709_v20 = vadd.f32 %v707_v60, %v699_v59 }
 0xcd3   :  { %1537 = vtanh.f32 %v709_v20 }
 0xcdd   :  { %v1538_v61 = vpop.eup %1537 }
 0xcde   :  { %712 = vrot.lane.b32.xlu1 %v1538_v61, %s1566_s18 }
 0xd50   :  { %v713_v62 = vpop.permute.xlu1 %712 }
 0xd51   :  { %v715_v63 = vmul.f32 %v1536_v56, %v713_v62 }
 0xd53   :  { %717 = vrot.lane.b32.xlu0 %v715_v63, %s1567_s2 }
 0xdc5   :  { %v718_v0 = vpop.permute.xlu0 %717 }
 0xdc6   :  { %721 = vst.msk [vmem:[#allocation3 + $0x20] sm:$0xff] %vm194_vm2, %v718_v0  ;;  %1387 = vmatmul.mubr.msk.f32.vlgmr.msra.gmra.mrb[10].mxu1 %vm194_vm2, %v718_v0 }
 0xdc7   :  { %1479 = vmatpush3.bf16.msra.mxu1 %v1646_v8  ;;  %1408 = vmatprep.mubr.msk.f32.mxu1 %vm1564_vm1, %v1565_v16 }
 0xdc8   :  { %1480 = vmatprep.subr.bf16.mxu1 %v1563_v10 }
 0xdcb   :  { %1482 = vmatpush3.bf16.msra.mxu1 %v1670_v15 }
 0xdcd   :  { %v1047_v33 = vld [vmem:[#allocation3 + $0x20] sm:$0xff] }
 0xe99   :  { %v792_v2 = vpop.f32.mrb[10].mxu1 }
 0xe9a   :  { %v796_v3 = vadd.f32 %v792_v2, %v166_v1  ;;  %v1388_v4 = vpop.f32.mrb[11].mxu1  ;;  %v176_v1 = vadd.f32 %v1701_v23, %v1699_v22 }
 0xe9c   :  { %1539 = vtanh.f32 %v796_v3  ;;  %v1231_v6 = vmul.f32 -1.442695, %v796_v3 }
 0xe9e   :  { %1541 = vpow2.f32 %v1231_v6 }
 0xea6   :  { %v1540_v5 = vpop.eup %1539 }
 0xea7   :  { %806 = vrot.lane.b32.xlu1 %v1540_v5, %s1566_s18 }
 0xea8   :  { %v1542_v8 = vpop.eup %1541 }
 0xea9   :  { %v800_v7 = vadd.f32 1.0, %v1542_v8 }
 0xeab   :  { %1543 = vrcp.f32 %v800_v7 }
 0xeb5   :  { %v1544_v16 = vpop.eup %1543 }
 0xeb6   :  { %v804_v15 = vmul.f32 %v1544_v16, %v709_v20 }
 0xf19   :  { %v807_v9 = vpop.permute.xlu1 %806 }
 0xf1a   :  { %v809_v10 = vmul.f32 %v1544_v16, %v807_v9 }
 0xf1c   :  { %811 = vrot.lane.b32.xlu0 %v809_v10, %s1566_s18 }
 0xf8e   :  { %v812_v11 = vpop.permute.xlu0 %811 }
 0xf8f   :  { %v1787_v18 = vadd.f32 %v812_v11, %v804_v15 }
 0xf91   :  { %1545 = vtanh.f32 %v1787_v18 }
 0xf9b   :  { %v1546_v17 = vpop.eup %1545 }
 0xf9c   :  { %817 = vrot.lane.b32.xlu1 %v1546_v17, %s1566_s18 }
0x100e   :  { %v818_v19 = vpop.permute.xlu1 %817 }
0x100f   :  { %v820_v21 = vmul.f32 %v1544_v16, %v818_v19 }
0x1011   :  { %822 = vrot.lane.b32.xlu0 %v820_v21, %s1567_s2 }
0x1083   :  { %v823_v28 = vpop.permute.xlu0 %822 }
0x1084   :  { %826 = vst.msk [vmem:[#allocation3 + $0x28] sm:$0xff] %vm194_vm2, %v823_v28  ;;  %1398 = vmatmul.mubr.msk.f32.vlgmr.msra.gmra.mrb[8].mxu0 %vm194_vm2, %v823_v28 }
0x1085   :  { %1486 = vmatpush3.bf16.msra.mxu0 %v1483_v14  ;;  %1419 = vmatprep.mubr.msk.f32.mxu0 %vm194_vm2, %v1043_v29 }
0x1086   :  { %1488 = vmatprep.subr.bf16.mxu0 %v1487_v27 }
0x1089   :  { %1490 = vmatpush3.bf16.msra.mxu0 %v1487_v27 }
0x108b   :  { %v1048_v34 = vld [vmem:[#allocation3 + $0x28] sm:$0xff] }
0x108c   :  { %1420 = vmatmul.mubr.msk.f32.vlgmr.msra.gmra.mrb[10].mxu0 %vm194_vm2, %v1044_v30 }
0x108d   :  { %1422 = vmatprep.mubr.msk.f32.mxu0 %vm194_vm2, %v1045_v31 }
0x1090   :  { %1423 = vmatmul.mubr.msk.f32.gmra.mrb[12].mxu0 %vm194_vm2, %v1046_v32 }
0x1091   :  { %1425 = vmatprep.mubr.msk.f32.mxu0 %vm194_vm2, %v1047_v33 }
0x1094   :  { %1426 = vmatmul.mubr.msk.f32.gmra.mrb[14].mxu0 %vm194_vm2, %v1048_v34 }
0x1157   :  { %v897_v36 = vpop.f32.mrb[8].mxu0 }
0x1158   :  { %v901_v37 = vadd.f32 %v897_v36, %v171_v35  ;;  %v1399_v38 = vpop.f32.mrb[9].mxu0 }
0x115a   :  { %1547 = vtanh.f32 %v901_v37  ;;  %v1233_v52 = vmul.f32 -1.442695, %v901_v37 }
0x115c   :  { %1549 = vpow2.f32 %v1233_v52 }
0x115f   :  { %v1421_v40 = vpop.f32.mrb[10].mxu0 }
0x1160   :  { %v1158_v41 = vadd.f32 %v1421_v40, %v1817_v39  ;;  %v1152_v42 = vpop.f32.mrb[11].mxu0 }
0x1161   :  { %v1153_v43 = vadd.f32 %v1817_v39, %v1152_v42 }
0x1162   :  { %1192 = vst [vmem:[%s1883_s8 + $0x8] sm:$0xff] %v1158_v41 }
0x1163   :  { %1191 = vst [vmem:[%s1883_s8] sm:$0xff] %v1153_v43  ;;  %v1424_v24 = vpop.f32.mrb[12].mxu0 }
0x1164   :  { %v1548_v44 = vpop.eup %1547  ;;  %v1168_v45 = vadd.f32 %v1424_v24, %v1817_v39  ;;  %v1162_v46 = vpop.f32.mrb[13].mxu0 }
0x1165   :  { %v1163_v47 = vadd.f32 %v1817_v39, %v1162_v46  ;;  %911 = vrot.lane.b32.xlu1 %v1548_v44, %s1566_s18 }
0x1166   :  { %1194 = vst [vmem:[%s1883_s8 + $0x18] sm:$0xff] %v1168_v45  ;;  %v1550_v53 = vpop.eup %1549 }
0x1167   :  { %1193 = vst [vmem:[%s1883_s8 + $0x10] sm:$0xff] %v1163_v47  ;;  %v1427_v48 = vpop.f32.mrb[14].mxu0  ;;  %v905_v54 = vadd.f32 1.0, %v1550_v53 }
0x1168   :  { %v1178_v49 = vadd.f32 %v1427_v48, %v1817_v39  ;;  %v1172_v50 = vpop.f32.mrb[15].mxu0 }
0x1169   :  { %v1173_v51 = vadd.f32 %v1817_v39, %v1172_v50  ;;  %1551 = vrcp.f32 %v905_v54 }
0x116a   :  { %1196 = vst [vmem:[%s1883_s8 + $0x28] sm:$0xff] %v1178_v49 }
0x116b   :  { %1195 = vst [vmem:[%s1883_s8 + $0x20] sm:$0xff] %v1173_v51 }
0x1173   :  { %v1552_v55 = vpop.eup %1551 }
0x1174   :  { %v909_v58 = vmul.f32 %v1552_v55, %v1787_v18 }
0x11d7   :  { %v912_v56 = vpop.permute.xlu1 %911 }
0x11d8   :  { %v914_v57 = vmul.f32 %v1552_v55, %v912_v56 }
0x11da   :  { %916 = vrot.lane.b32.xlu0 %v914_v57, %s1566_s18 }
0x124c   :  { %v917_v59 = vpop.permute.xlu0 %916 }
0x124d   :  { %v919_v60 = vadd.f32 %v917_v59, %v909_v58 }
0x124f   :  { %1553 = vtanh.f32 %v919_v60 }
0x1259   :  { %v1554_v20 = vpop.eup %1553 }
0x125a   :  { %922 = vrot.lane.b32.xlu1 %v1554_v20, %s1566_s18 }
0x12cc   :  { %v923_v61 = vpop.permute.xlu1 %922 }
0x12cd   :  { %v925_v62 = vmul.f32 %v1552_v55, %v923_v61 }
0x12cf   :  { %927 = vrot.lane.b32.xlu0 %v925_v62, %s1567_s2 }
0x1341   :  { %v928_v63 = vpop.permute.xlu0 %927 }
0x1342   :  { %931 = vst.msk [vmem:[#allocation3 + $0x30] sm:$0xff] %vm194_vm2, %v928_v63  ;;  %1409 = vmatmul.mubr.msk.f32.vlgmr.msra.gmra.mrb[12].mxu1 %vm194_vm2, %v928_v63 }
0x1349   :  { %v1049_v0 = vld [vmem:[#allocation3 + $0x30] sm:$0xff] }
0x134a   :  { %1428 = vmatprep.mubr.msk.f32.mxu0 %vm194_vm2, %v1049_v0 }
0x1415   :  { %v1002_v2 = vpop.f32.mrb[12].mxu1 }
0x1416   :  { %v1006_v3 = vadd.f32 %v1002_v2, %v176_v1  ;;  %v1410_v4 = vpop.f32.mrb[13].mxu1 }
0x1418   :  { %1555 = vtanh.f32 %v1006_v3  ;;  %v1235_v6 = vmul.f32 -1.442695, %v1006_v3 }
0x141a   :  { %1557 = vpow2.f32 %v1235_v6 }
0x1422   :  { %v1556_v5 = vpop.eup %1555 }
0x1423   :  { %1016 = vrot.lane.b32.xlu1 %v1556_v5, %s1566_s18 }
0x1424   :  { %v1558_v8 = vpop.eup %1557 }
0x1425   :  { %v1010_v7 = vadd.f32 1.0, %v1558_v8 }
0x1427   :  { %1559 = vrcp.f32 %v1010_v7 }
0x1431   :  { %v1560_v16 = vpop.eup %1559 }
0x1432   :  { %v1014_v15 = vmul.f32 %v1560_v16, %v919_v60 }
0x1495   :  { %v1017_v9 = vpop.permute.xlu1 %1016 }
0x1496   :  { %v1019_v10 = vmul.f32 %v1560_v16, %v1017_v9 }
0x1498   :  { %1021 = vrot.lane.b32.xlu0 %v1019_v10, %s1566_s18 }
0x150a   :  { %v1022_v11 = vpop.permute.xlu0 %1021 }
0x150b   :  { %v1024_v22 = vadd.f32 %v1022_v11, %v1014_v15 }
0x150d   :  { %1561 = vtanh.f32 %v1024_v22 }
0x1517   :  { %v1562_v23 = vpop.eup %1561 }
0x1518   :  { %1027 = vrot.lane.b32.xlu1 %v1562_v23, %s1566_s18 }
0x151c   :  { %1039 = vrot.lane.b32.xlu1 %v1024_v22, %s1568_s5 }
0x158a   :  { %v1028_v18 = vpop.permute.xlu1 %1027 }
0x158b   :  { %v1030_v12 = vmul.f32 %v1560_v16, %v1028_v18 }
0x158d   :  { %1032 = vrot.lane.b32.xlu0 %v1030_v12, %s1567_s2 }
0x158e   :  { %v1040_v13 = vpop.permute.xlu1 %1039 }
0x158f   :  { %1042 = vst.msk [vmem:[%s1884_s10] sm:$0xff] %vm194_vm2, %v1040_v13 }
0x15ff   :  { %v1033_v14 = vpop.permute.xlu0 %1032 }
0x1600   :  { %1036 = vst.msk [vmem:[#allocation3 + $0x38] sm:$0xff] %vm194_vm2, %v1033_v14  ;;  %1037 = vst.msk [vmem:[%s1885_s9] sm:$0xff] %vm194_vm2, %v1033_v14 }
0x1607   :  { %v1050_v17 = vld [vmem:[#allocation3 + $0x38] sm:$0xff] }
0x1608   :  { %1429 = vmatmul.mubr.msk.f32.gmra.mrb[16].mxu0 %vm194_vm2, %v1050_v17 }
0x16db   :  { %v1430_v19 = vpop.f32.mrb[16].mxu0 }
0x16dc   :  { %v1188_v21 = vadd.f32 %v1430_v19, %v1817_v39  ;;  %v1182_v25 = vpop.f32.mrb[17].mxu0 }
0x16dd   :  { %v1183_v26 = vadd.f32 %v1817_v39, %v1182_v25 }
0x16de   :  { %1198 = vst [vmem:[%s1883_s8 + $0x38] sm:$0xff] %v1188_v21 }
0x16df   :  { %1197 = vst [vmem:[%s1883_s8 + $0x30] sm:$0xff] %v1183_v26 }

</bundles_post_ra>
